<compile_context>
chip_gen: v5e
topology: v5e:2x2
jax: 0.10.0
libtpu: 0.0.40
codegen_flags: <defaults>
</compile_context>

<pallas_src>
import functools

import jax
import jax.numpy as jnp
from jax.experimental import pallas as pl
from jax.experimental.pallas import tpu as pltpu


def _cdiv(a, b):
    return (a + b - 1) // b


def _round_up(a, b):
    return _cdiv(a, b) * b


def _ffn_kernel(x_ref, w_ref, b_ref, o_ref):
    # x_ref: (tm, PL)  packed rows: P positions x L features, lane-dense
    # w_ref: (PL, PL)  block-diagonal kron(I_P, W^T), resident across the grid
    # b_ref: (1, PL)   bias tiled P times, f32, resident
    # o_ref: (tm, PL)
    acc = jnp.dot(x_ref[...], w_ref[...], preferred_element_type=jnp.float32)
    o_ref[...] = (acc + b_ref[...]).astype(o_ref.dtype)


def _device_config():
    """Best-effort generation detection; falls back to the v7x-safe config."""
    try:
        kind = jax.devices()[0].device_kind.lower()
    except Exception:
        kind = ""
    # Positively-identified single-TensorCore chips with 128 MiB VMEM
    # (v5e / v6e): bigger tiles, no 2-way grid split, higher VMEM budget.
    single_tc = any(s in kind for s in ("v5 lite", "v5e", "v6")) and "v5p" not in kind
    if single_tc:
        return dict(tm_max=16384, two_way_split=False,
                    vmem_limit=64 * 1024 * 1024)
    # v7x (2 TCs, 64 MiB/TC), v4/v5p megacore, and unknown chips:
    # conservative VMEM limit, balanced (even) step count across cores.
    return dict(tm_max=8192, two_way_split=True, vmem_limit=48 * 1024 * 1024)


def _pick_tm(mp, sublane, cfg):
    tm_max = cfg["tm_max"]
    if cfg["two_way_split"] and mp >= 2 * sublane:
        if mp <= 2 * tm_max:
            steps = 2                               # one slice per TensorCore
        else:
            steps = 2 * _cdiv(mp, 2 * tm_max)       # even step count, tm <= tm_max
    else:
        steps = max(1, _cdiv(mp, tm_max))           # single step whenever it fits
    return max(sublane, _round_up(_cdiv(mp, steps), sublane))


@functools.partial(jax.jit, static_argnames=("tm",))
def position_wise_ffn(y, weight, bias, *, tm=None):
    """y: (B, N, L); weight: (L, L) laid out [out, in]; bias: (L,)."""
    B, N, L = y.shape
    M = B * N
    itemsize = jnp.dtype(y.dtype).itemsize
    sublane = max(8, 32 // itemsize)   # 8 for f32, 16 for bf16, 32 for int8/fp8

    # Pack P consecutive positions into one 128-lane row when L divides 128.
    P = 128 // L if (L < 128 and 128 % L == 0) else 1
    PL = P * L
    Mp = _cdiv(M, P)                   # packed rows holding real data

    cfg = _device_config()
    if tm is None:
        tm = _pick_tm(Mp, sublane, cfg)
    tm = max(sublane, _round_up(tm, sublane))
    grid = _cdiv(Mp, tm)               # ragged last block handled by Pallas

    # Lane-dense packing is a pure row-major view when P | M (common case).
    x = y.reshape(M, L)
    if M % P != 0:
        # TODO(synk): this zero-pad (and the matching [:M] slice below) costs
        # one extra HBM round trip of the activation; only taken when P does
        # not divide B*N.
        x = jnp.pad(x, ((0, Mp * P - M), (0, 0)))
    xp = x.reshape(Mp, PL)

    # Fold the (L, L) [out, in] weight into a lane-dense (PL, PL) operand:
    # W_big[k*L + l, k*L + j] = W[j, l]  (block-diagonal kron(I_P, W^T)).
    # Cast to the activation dtype (no-op for f32; bf16 activations quantize W
    # to bf16 while MXU accumulation stays f32).
    wt = weight.astype(y.dtype).T                           # (L_in, L_out)
    if P > 1:
        w_big = jnp.kron(jnp.eye(P, dtype=y.dtype), wt)     # (PL, PL)
        b_big = jnp.tile(bias.astype(jnp.float32), P).reshape(1, PL)
    else:
        w_big = wt
        b_big = bias.reshape(1, L).astype(jnp.float32)

    cost = pl.CostEstimate(
        # Actual MXU work includes the P-fold block-diagonal inflation.
        flops=2 * Mp * PL * PL,
        transcendentals=0,
        bytes_accessed=2 * M * L * itemsize + PL * PL * itemsize + PL * 4,
    )

    out = pl.pallas_call(
        _ffn_kernel,
        out_shape=jax.ShapeDtypeStruct((Mp, PL), y.dtype),
        grid_spec=pltpu.PrefetchScalarGridSpec(
            num_scalar_prefetch=0,
            grid=(grid,),
            in_specs=[
                pl.BlockSpec((tm, PL), lambda i: (i, 0)),
                # Constant index_map: weight/bias are DMA'd once and stay
                # resident; the unused default second buffer is ~64 KiB,
                # negligible against the VMEM budget.
                pl.BlockSpec((PL, PL), lambda i: (0, 0)),
                pl.BlockSpec((1, PL), lambda i: (0, 0)),
            ],
            out_specs=pl.BlockSpec((tm, PL), lambda i: (i, 0)),
        ),
        compiler_params=pltpu.CompilerParams(
            dimension_semantics=("parallel",),
            vmem_limit_bytes=cfg["vmem_limit"],
        ),
        cost_estimate=cost,
    )(xp, w_big, b_big)

    # Unpack lanes back to positions; a free view when P | M.
    if M % P == 0:
        return out.reshape(B, N, L)
    return out.reshape(Mp * P, L)[:M].reshape(B, N, L)


if __name__ == "__main__":
    B, N, L = 2, 16, 32

    key = jax.random.PRNGKey(0)
    k_x, k_w, k_b = jax.random.split(key, 3)

    # Input (B, N, L)
    y = jax.random.normal(k_x, (B, N, L), dtype=jnp.float32)

    # Conv2d(1, L, kernel=(1, L)) weight has shape (L, 1, 1, L); kaiming_normal_
    # with fan_in = 1*1*L -> std = sqrt(2 / L). Built directly as (L, L) [out, in].
    std = (2.0 / L) ** 0.5
    weight = std * jax.random.normal(k_w, (L, L), dtype=jnp.float32)

    # PyTorch Conv2d default bias init: U(-1/sqrt(fan_in), 1/sqrt(fan_in)).
    bound = 1.0 / (L ** 0.5)
    bias = jax.random.uniform(
        k_b, (L,), dtype=jnp.float32, minval=-bound, maxval=bound)

    out = position_wise_ffn(y, weight, bias)
    out = jax.block_until_ready(out)

    # Pure-JAX reference check of the conv-as-matmul semantics.
    ref = jnp.einsum("bnl,jl->bnj", y, weight) + bias[None, None, :]
    assert out.shape == (B, N, L)
    assert jnp.allclose(out, ref, atol=1e-5, rtol=1e-5)

    print("KERNEL_OK")
</pallas_src>

<mosaic_0001>
module attributes {stable_mosaic.version = 11 : i64} {
  func.func @_ffn_kernel(%arg0: i32, %arg1: memref<8x128xf32, #tpu.memory_space<vmem>>, %arg2: memref<128x128xf32, #tpu.memory_space<vmem>>, %arg3: memref<1x128xf32, #tpu.memory_space<vmem>>, %arg4: memref<8x128xf32, #tpu.memory_space<vmem>>) attributes {dimension_semantics = [#tpu.dimension_semantics<parallel>], iteration_bounds = array<i64: 1>, scalar_prefetch = 0 : i64, scratch_operands = 0 : i64, tpu.core_type = #tpu.core_type<tc>, window_params = [{transform_indices = @transform_0, window_bounds = array<i64: 8, 128>}, {pipeline_mode = #tpu.pipeline_mode<synchronous>, transform_indices = @transform_1, window_bounds = array<i64: 128, 128>}, {pipeline_mode = #tpu.pipeline_mode<synchronous>, transform_indices = @transform_2, window_bounds = array<i64: 1, 128>}, {transform_indices = @transform_3, window_bounds = array<i64: 8, 128>}]} {
    %c0 = arith.constant 0 : index
    %c0_0 = arith.constant 0 : index
    %0 = vector.load %arg1[%c0, %c0_0] : memref<8x128xf32, #tpu.memory_space<vmem>>, vector<8x128xf32>
    %c0_1 = arith.constant 0 : index
    %c0_2 = arith.constant 0 : index
    %1 = vector.load %arg2[%c0_1, %c0_2] : memref<128x128xf32, #tpu.memory_space<vmem>>, vector<128x128xf32>
    %cst = arith.constant dense<0.000000e+00> : vector<8x128xf32>
    %2 = tpu.matmul %0, %1, %cst {dimension_numbers = #tpu.dot_dimension_numbers<[1], [0], [0], [1], [0, 0, 1, 1], [], []>} : vector<8x128xf32>, vector<128x128xf32>, vector<8x128xf32> -> vector<8x128xf32>
    %c0_3 = arith.constant 0 : index
    %c0_4 = arith.constant 0 : index
    %3 = vector.load %arg3[%c0_3, %c0_4] : memref<1x128xf32, #tpu.memory_space<vmem>>, vector<1x128xf32>
    %4 = vector.broadcast %3 : vector<1x128xf32> to vector<8x128xf32>
    %5 = arith.addf %2, %4 : vector<8x128xf32>
    %c0_5 = arith.constant 0 : index
    %c0_6 = arith.constant 0 : index
    %6 = vector.load %arg4[%c0_5, %c0_6] : memref<8x128xf32, #tpu.memory_space<vmem>>, vector<8x128xf32>
    tpu.vector_store %arg4[%c0_5, %c0_6], %5 {strides = array<i32>} : memref<8x128xf32, #tpu.memory_space<vmem>>, vector<8x128xf32>,
    return
  }
  func.func @transform_0(%arg0: i32) -> (i32, i32) {
    %c0_i32 = arith.constant 0 : i32
    %c0_i32_0 = arith.constant 0 : i32
    return %arg0, %c0_i32 : i32, i32
  }
  func.func @transform_1(%arg0: i32) -> (i32, i32) {
    %c0_i32 = arith.constant 0 : i32
    %c0_i32_0 = arith.constant 0 : i32
    %c0_i32_1 = arith.constant 0 : i32
    return %c0_i32, %c0_i32_0 : i32, i32
  }
  func.func @transform_2(%arg0: i32) -> (i32, i32) {
    %c0_i32 = arith.constant 0 : i32
    %c0_i32_0 = arith.constant 0 : i32
    %c0_i32_1 = arith.constant 0 : i32
    return %c0_i32, %c0_i32_0 : i32, i32
  }
  func.func @transform_3(%arg0: i32) -> (i32, i32) {
    %c0_i32 = arith.constant 0 : i32
    %c0_i32_0 = arith.constant 0 : i32
    return %arg0, %c0_i32 : i32, i32
  }
}

</mosaic_0001>

<bundles_post_ra>
// kernel: tile.8
= control target key start
LH: loop header
LB: loop body
LE: loop exit
PB: predicated region body
PF: predicated region fallthrough
CT: control target
= control target key end

     0   :  { %s22_s0 = inlined_call_operand.vmem [shape: f32[32], index: 0, kind: input, shape index: {}]   ;;  %s23_s1 = inlined_call_operand.vmem [shape: f32[4,32], index: 1, kind: output, shape index: {}]  }
   0x1   :  { %v4_v0 = vld [vmem:[%s22_s0] ss:$0 sm:$0xff] }
   0x2   :  { %5 = vst [vmem:[%s23_s1] sm:$0xf] %v4_v0 }

// kernel: tile.9
= control target key start
LH: loop header
LB: loop body
LE: loop exit
PB: predicated region body
PF: predicated region fallthrough
CT: control target
= control target key end

     0   :  { %s37_s8 = smov 32   ;;  %s38_s9 = smov 64   ;;  %vm7_vm0 = vcmask 261120   ;;  %vm13_vm1 = vcmask 1048320   ;;  %vm19_vm2 = vcmask 785920   ;;  %vm25_vm3 = vcmask 523520   ;;  %s55_s0 = inlined_call_operand.vmem [shape: f32[4,32], index: 0, kind: input, shape index: {}]   ;;  %s56_s1 = inlined_call_operand.vmem [shape: f32[1,128], index: 1, kind: output, shape index: {}]  }
   0x1   :  { %v4_v0 = vld [vmem:[%s55_s0] sm:$0xf]  ;;  %s36_s0 = smov 96  }
   0x2   :  { %5 = vst [vmem:[#allocation1] sm:$0xf] %v4_v0 }
   0x9   :  { %v10_v1 = vld [vmem:[#allocation1 + $0x3] sm:$0x1]   ;;  %v22_v2 = vld [vmem:[#allocation1 + $0x1] sm:$0x1]   ;;  %v16_v3 = vld [vmem:[#allocation1 + $0x2] sm:$0x1]  }
   0xa   :  { %11 = vrot.lane.b32.xlu0 %v10_v1, %s36_s0  ;;  %23 = vrot.lane.b32.xlu1 %v22_v2, %s37_s8  ;;  %v6_v4 = vld [vmem:[#allocation1] sm:$0x1]  }
   0xb   :  { %8 = vst.msk [vmem:[#allocation0] sm:$0x1] %vm7_vm0, %v6_v4  }
  0x12   :  { %17 = vrot.lane.b32.xlu0 %v16_v3, %s38_s9 }
  0x7c   :  { %v12_v5 = vpop.permute.xlu0 %11   ;;  %v24_v6 = vpop.permute.xlu1 %23  }
  0x7d   :  { %14 = vst.msk [vmem:[#allocation0] sm:$0x1] %vm13_vm1, %v12_v5  }
  0x84   :  { %v18_v7 = vpop.permute.xlu0 %17  }
  0x85   :  { %20 = vst.msk [vmem:[#allocation0] sm:$0x1] %vm19_vm2, %v18_v7  }
  0x86   :  { %26 = vst.msk [vmem:[#allocation0] sm:$0x1] %vm25_vm3, %v24_v6  }
  0x8d   :  { %v29_v8 = vld [vmem:[#allocation0] sm:$0x1] }
  0x8e   :  { %32 = vst [vmem:[%s56_s1] sm:$0x1] %v29_v8 }

// kernel: position_wise_ffn.1
= control target key start
LH: loop header
LB: loop body
LE: loop exit
PB: predicated region body
PF: predicated region fallthrough
CT: control target
= control target key end

     0   :  { %s138_s1 = inlined_call_operand.vmem [shape: f32[128,128], index: 1, kind: input, shape index: {}]   ;;  %s139_s2 = inlined_call_operand.vmem [shape: f32[1,128], index: 2, kind: input, shape index: {}]   ;;  %s140_s0 = inlined_call_operand.vmem [shape: f32[8,128], index: 0, kind: input, shape index: {}]   ;;  %s141_s3 = inlined_call_operand.vmem [shape: f32[8,128], index: 3, kind: output, shape index: {}]  }
   0x1   :  { %v30_v0 = vld [vmem:[%s138_s1 + $0x78] sm:$0xff]  ;;  %v29_v1 = vld [vmem:[%s138_s1 + $0x70] sm:$0xff]  ;;  %v28_v2 = vld [vmem:[%s138_s1 + $0x68] sm:$0xff] }
   0x2   :  { %35 = vmatpush.msra.mxu0 %v30_v0  ;;  %v27_v3 = vld [vmem:[%s138_s1 + $0x60] sm:$0xff]  ;;  %v26_v4 = vld [vmem:[%s138_s1 + $0x58] sm:$0xff]  ;;  %v25_v5 = vld [vmem:[%s138_s1 + $0x50] sm:$0xff] }
   0x3   :  { %v24_v6 = vld [vmem:[%s138_s1 + $0x48] sm:$0xff]  ;;  %v23_v7 = vld [vmem:[%s138_s1 + $0x40] sm:$0xff]  ;;  %v22_v8 = vld [vmem:[%s138_s1 + $0x38] sm:$0xff] }
   0x4   :  { %36 = vmatpush.msra.mxu0 %v29_v1  ;;  %v21_v9 = vld [vmem:[%s138_s1 + $0x30] sm:$0xff]  ;;  %v20_v10 = vld [vmem:[%s138_s1 + $0x28] sm:$0xff]  ;;  %v19_v11 = vld [vmem:[%s138_s1 + $0x20] sm:$0xff] }
   0x5   :  { %v18_v12 = vld [vmem:[%s138_s1 + $0x18] sm:$0xff]  ;;  %v17_v13 = vld [vmem:[%s138_s1 + $0x10] sm:$0xff]  ;;  %v16_v14 = vld [vmem:[%s138_s1 + $0x8] sm:$0xff] }
   0x6   :  { %37 = vmatpush.msra.mxu0 %v28_v2  ;;  %v15_v15 = vld [vmem:[%s138_s1] sm:$0xff] }
   0x7   :  { %v14_v16 = vld [vmem:[%s140_s0] sm:$0xff] }
   0x8   :  { %38 = vmatpush.msra.mxu0 %v27_v3  ;;  %v60_v17 = vld [vmem:[%s139_s2] ss:$0 sm:$0xff] }
   0xa   :  { %39 = vmatpush.msra.mxu0 %v26_v4 }
   0xc   :  { %40 = vmatpush.msra.mxu0 %v25_v5 }
   0xe   :  { %41 = vmatpush.msra.mxu0 %v24_v6 }
  0x10   :  { %42 = vmatpush.msra.mxu0 %v23_v7 }
  0x12   :  { %43 = vmatpush.msra.mxu0 %v22_v8 }
  0x14   :  { %44 = vmatpush.msra.mxu0 %v21_v9 }
  0x16   :  { %45 = vmatpush.msra.mxu0 %v20_v10 }
  0x18   :  { %46 = vmatpush.msra.mxu0 %v19_v11 }
  0x1a   :  { %47 = vmatpush.msra.mxu0 %v18_v12 }
  0x1c   :  { %48 = vmatpush.msra.mxu0 %v17_v13 }
  0x1e   :  { %49 = vmatpush.msra.mxu0 %v16_v14 }
  0x20   :  { %50 = vmatpush.msra.mxu0 %v15_v15 }
  0x21   :  { %51 = vmatmul.f32.vlgmr.msra.gmra.mxu0 %v14_v16 }
  0x9e   :  { %v52_v18 = vpop.f32.mrf.mxu0 }
  0x9f   :  { %v53_v19 = vadd.f32 %v60_v17, %v52_v18 }
  0xa1   :  { %55 = vst [vmem:[%s141_s3] sm:$0xff] %v53_v19 }

</bundles_post_ra>
